<compile_context>
chip_gen: v7x
topology: tpu7x:2x2x1
jax: 0.10.0
libtpu: 0.0.40
codegen_flags: <defaults>
</compile_context>

<pallas_src>
import jax
import jax.numpy as jnp
from jax.experimental import pallas as pl
from jax.experimental.pallas import tpu as pltpu

_LANES = 128


def _head_kernel(x0_ref, x1_ref, w1_ref, b1_ref, w2_ref, b2_ref, o_ref):
    # x0, x1 : [TB, H]         CLS features of the even / odd example of each pair
    # w1     : [2H, H]         dense weight;       b1: [1, H]   (f32)
    # w2     : [H, n_pad]      out_proj weight zero-padded to 128-lane multiple
    # b2     : [1, n_pad] f32  out_proj bias  zero-padded
    # o      : [TB, n_pad] f32
    H = x0_ref.shape[-1]

    # dense(2H -> H) on the MXU with f32 accumulation.  Splitting W1 into its
    # top / bottom halves gives x_pair @ W1 == x0 @ W1[:H] + x1 @ W1[H:].
    h = jnp.dot(x0_ref[...], w1_ref[:H, :], preferred_element_type=jnp.float32)
    h = h + jnp.dot(x1_ref[...], w1_ref[H:, :], preferred_element_type=jnp.float32)
    h = jnp.tanh(h + b1_ref[...])                      # f32 bias add + EUP tanh

    # out_proj(H -> 2), padded to lane-dense output columns.
    out = jnp.dot(h.astype(w2_ref.dtype), w2_ref[...],
                  preferred_element_type=jnp.float32) + b2_ref[...]
    o_ref[...] = out.astype(o_ref.dtype)


def roberta_classification_head(features, w_dense, b_dense, w_out, b_out,
                                *, block_b=256):
    """features: [N, S, H] (N even); w_dense: [2H, H]; b_dense: [H];
    w_out: [H, n_cls]; b_out: [n_cls].  Returns [N//2, n_cls] f32 logits."""
    N, S, H = features.shape
    assert N % 2 == 0, "examples come in pairs"
    assert H % _LANES == 0, "hidden size must be a multiple of 128 (fused CLS DMA)"
    B = N // 2
    n_cls = w_out.shape[-1]
    n_pad = ((n_cls + _LANES - 1) // _LANES) * _LANES

    # Free contiguous view: row b = [example 2b (S*H floats) | example 2b+1 (S*H)].
    feats2d = features.reshape(B, 2 * S * H)

    # Biases in f32; out_proj weight/bias zero-padded to lane width (exact).
    b1 = b_dense.astype(jnp.float32).reshape(1, H)
    w2 = jnp.zeros((H, n_pad), dtype=w_out.dtype).at[:, :n_cls].set(w_out)
    b2 = jnp.zeros((1, n_pad), dtype=jnp.float32).at[:, :n_cls].set(
        b_out.astype(jnp.float32))

    # Batch tile: whole B if small (block == full dim is always legal),
    # otherwise an MXU-friendly 256-row tile; ragged last tile is masked by Pallas.
    tb = B if B <= block_b else block_b
    grid = (pl.cdiv(B, tb),)

    x_bytes = features.dtype.itemsize
    w_bytes = w_dense.dtype.itemsize
    cost = pl.CostEstimate(
        flops=2 * B * (2 * H) * H + 2 * B * H * n_pad,
        transcendentals=B * H,
        bytes_accessed=(B * 2 * H * x_bytes            # CLS activation stream
                        + 2 * H * H * w_bytes          # W1
                        + H * n_pad * w_bytes          # W2 (padded)
                        + (H + n_pad) * 4              # biases
                        + B * n_pad * 4),              # output
    )

    out = pl.pallas_call(
        _head_kernel,
        out_shape=jax.ShapeDtypeStruct((B, n_pad), jnp.float32),
        grid=grid,
        in_specs=[
            pl.BlockSpec((tb, H), lambda i: (i, 0)),       # even-example CLS
            pl.BlockSpec((tb, H), lambda i: (i, S)),       # odd-example CLS
            pl.BlockSpec((2 * H, H), lambda i: (0, 0)),    # W1   (VMEM-resident)
            pl.BlockSpec((1, H), lambda i: (0, 0)),        # b1   (VMEM-resident)
            pl.BlockSpec((H, n_pad), lambda i: (0, 0)),    # W2   (VMEM-resident)
            pl.BlockSpec((1, n_pad), lambda i: (0, 0)),    # b2   (VMEM-resident)
        ],
        out_specs=pl.BlockSpec((tb, n_pad), lambda i: (i, 0)),
        compiler_params=pltpu.CompilerParams(
            dimension_semantics=("parallel",)),
        cost_estimate=cost,
    )(feats2d, feats2d, w_dense, b1, w2, b2)

    return out[:, :n_cls]


if __name__ == "__main__":
    # Small, module-consistent shapes: hidden=128 (lane-aligned), seq=8,
    # 8 examples = 4 pairs.
    hidden = 128
    seq = 8
    n_examples = 8  # must be even (pairs of code snippets)

    key = jax.random.PRNGKey(0)
    k_feat, k_w1, k_b1, k_w2, k_b2 = jax.random.split(key, 5)

    features = jax.random.normal(k_feat, (n_examples, seq, hidden), dtype=jnp.float32)

    # Deterministic parameter init (shapes from nn.Linear in __init__), stored
    # as (in, out) matrices:
    #   dense:    Linear(2*hidden, hidden)  -> W1 (2H, H), b1 (H,)
    #   out_proj: Linear(hidden, 2)         -> W2 (H, 2),  b2 (2,)
    w_dense = jax.random.normal(k_w1, (2 * hidden, hidden), dtype=jnp.float32) * 0.02
    b_dense = jax.random.normal(k_b1, (hidden,), dtype=jnp.float32) * 0.02
    w_out = jax.random.normal(k_w2, (hidden, 2), dtype=jnp.float32) * 0.02
    b_out = jax.random.normal(k_b2, (2,), dtype=jnp.float32) * 0.02

    # f32 run + reference check.
    out = roberta_classification_head(features, w_dense, b_dense, w_out, b_out)
    out = jax.block_until_ready(out)

    x_ref = features[:, 0, :].reshape(-1, 2 * hidden)
    ref = jnp.tanh(x_ref @ w_dense + b_dense) @ w_out + b_out
    assert out.shape == (n_examples // 2, 2)
    assert jnp.allclose(out, ref, atol=1e-4, rtol=1e-4), float(jnp.max(jnp.abs(out - ref)))

    # bf16 activation/weight fast path (MXU bf16, f32 accumulation).
    out_bf16 = roberta_classification_head(
        features.astype(jnp.bfloat16), w_dense.astype(jnp.bfloat16), b_dense,
        w_out.astype(jnp.bfloat16), b_out)
    out_bf16 = jax.block_until_ready(out_bf16)
    assert out_bf16.shape == (n_examples // 2, 2)
    assert jnp.allclose(out_bf16, ref, atol=2e-2), float(jnp.max(jnp.abs(out_bf16 - ref)))

    print("KERNEL_OK")
</pallas_src>

<mosaic_0001>
module attributes {stable_mosaic.version = 11 : i64} {
  func.func @_head_kernel(%arg0: i32, %arg1: memref<4x128xf32, #tpu.memory_space<vmem>>, %arg2: memref<4x128xf32, #tpu.memory_space<vmem>>, %arg3: memref<256x128xf32, #tpu.memory_space<vmem>>, %arg4: memref<1x128xf32, #tpu.memory_space<vmem>>, %arg5: memref<128x128xf32, #tpu.memory_space<vmem>>, %arg6: memref<1x128xf32, #tpu.memory_space<vmem>>, %arg7: memref<4x128xf32, #tpu.memory_space<vmem>>) attributes {dimension_semantics = [#tpu.dimension_semantics<parallel>], iteration_bounds = array<i64: 1>, scalar_prefetch = 0 : i64, scratch_operands = 0 : i64, tpu.core_type = #tpu.core_type<tc>, window_params = [{transform_indices = @transform_0, window_bounds = array<i64: 4, 128>}, {transform_indices = @transform_1, window_bounds = array<i64: 4, 128>}, {pipeline_mode = #tpu.pipeline_mode<synchronous>, transform_indices = @transform_2, window_bounds = array<i64: 256, 128>}, {pipeline_mode = #tpu.pipeline_mode<synchronous>, transform_indices = @transform_3, window_bounds = array<i64: 1, 128>}, {pipeline_mode = #tpu.pipeline_mode<synchronous>, transform_indices = @transform_4, window_bounds = array<i64: 128, 128>}, {pipeline_mode = #tpu.pipeline_mode<synchronous>, transform_indices = @transform_5, window_bounds = array<i64: 1, 128>}, {transform_indices = @transform_6, window_bounds = array<i64: 4, 128>}]} {
    %c0 = arith.constant 0 : index
    %c0_0 = arith.constant 0 : index
    %0 = vector.load %arg1[%c0, %c0_0] : memref<4x128xf32, #tpu.memory_space<vmem>>, vector<4x128xf32>
    %c0_1 = arith.constant 0 : index
    %c0_2 = arith.constant 0 : index
    %1 = vector.load %arg3[%c0_1, %c0_2] : memref<256x128xf32, #tpu.memory_space<vmem>>, vector<128x128xf32>
    %cst = arith.constant dense<0.000000e+00> : vector<4x128xf32>
    %2 = tpu.matmul %0, %1, %cst {dimension_numbers = #tpu.dot_dimension_numbers<[1], [0], [0], [1], [0, 0, 1, 1], [], []>} : vector<4x128xf32>, vector<128x128xf32>, vector<4x128xf32> -> vector<4x128xf32>
    %c0_3 = arith.constant 0 : index
    %c0_4 = arith.constant 0 : index
    %3 = vector.load %arg2[%c0_3, %c0_4] : memref<4x128xf32, #tpu.memory_space<vmem>>, vector<4x128xf32>
    %c128 = arith.constant 128 : index
    %c0_5 = arith.constant 0 : index
    %4 = vector.load %arg3[%c128, %c0_5] : memref<256x128xf32, #tpu.memory_space<vmem>>, vector<128x128xf32>
    %cst_6 = arith.constant dense<0.000000e+00> : vector<4x128xf32>
    %5 = tpu.matmul %3, %4, %cst_6 {dimension_numbers = #tpu.dot_dimension_numbers<[1], [0], [0], [1], [0, 0, 1, 1], [], []>} : vector<4x128xf32>, vector<128x128xf32>, vector<4x128xf32> -> vector<4x128xf32>
    %6 = arith.addf %2, %5 : vector<4x128xf32>
    %c0_7 = arith.constant 0 : index
    %c0_8 = arith.constant 0 : index
    %7 = vector.load %arg4[%c0_7, %c0_8] : memref<1x128xf32, #tpu.memory_space<vmem>>, vector<1x128xf32>
    %8 = vector.broadcast %7 : vector<1x128xf32> to vector<4x128xf32>
    %9 = arith.addf %6, %8 : vector<4x128xf32>
    %10 = math.tanh %9 : vector<4x128xf32>
    %c0_9 = arith.constant 0 : index
    %c0_10 = arith.constant 0 : index
    %11 = vector.load %arg5[%c0_9, %c0_10] : memref<128x128xf32, #tpu.memory_space<vmem>>, vector<128x128xf32>
    %cst_11 = arith.constant dense<0.000000e+00> : vector<4x128xf32>
    %12 = tpu.matmul %10, %11, %cst_11 {dimension_numbers = #tpu.dot_dimension_numbers<[1], [0], [0], [1], [0, 0, 1, 1], [], []>} : vector<4x128xf32>, vector<128x128xf32>, vector<4x128xf32> -> vector<4x128xf32>
    %c0_12 = arith.constant 0 : index
    %c0_13 = arith.constant 0 : index
    %13 = vector.load %arg6[%c0_12, %c0_13] : memref<1x128xf32, #tpu.memory_space<vmem>>, vector<1x128xf32>
    %14 = vector.broadcast %13 : vector<1x128xf32> to vector<4x128xf32>
    %15 = arith.addf %12, %14 : vector<4x128xf32>
    %c0_14 = arith.constant 0 : index
    %c0_15 = arith.constant 0 : index
    %16 = vector.load %arg7[%c0_14, %c0_15] : memref<4x128xf32, #tpu.memory_space<vmem>>, vector<4x128xf32>
    tpu.vector_store %arg7[%c0_14, %c0_15], %15 {strides = array<i32>} : memref<4x128xf32, #tpu.memory_space<vmem>>, vector<4x128xf32>,
    return
  }
  func.func @transform_0(%arg0: i32) -> (i32, i32) {
    %c0_i32 = arith.constant 0 : i32
    %c0_i32_0 = arith.constant 0 : i32
    return %arg0, %c0_i32 : i32, i32
  }
  func.func @transform_1(%arg0: i32) -> (i32, i32) {
    %c8_i32 = arith.constant 8 : i32
    %c0_i32 = arith.constant 0 : i32
    return %arg0, %c8_i32 : i32, i32
  }
  func.func @transform_2(%arg0: i32) -> (i32, i32) {
    %c0_i32 = arith.constant 0 : i32
    %c0_i32_0 = arith.constant 0 : i32
    %c0_i32_1 = arith.constant 0 : i32
    return %c0_i32, %c0_i32_0 : i32, i32
  }
  func.func @transform_3(%arg0: i32) -> (i32, i32) {
    %c0_i32 = arith.constant 0 : i32
    %c0_i32_0 = arith.constant 0 : i32
    %c0_i32_1 = arith.constant 0 : i32
    return %c0_i32, %c0_i32_0 : i32, i32
  }
  func.func @transform_4(%arg0: i32) -> (i32, i32) {
    %c0_i32 = arith.constant 0 : i32
    %c0_i32_0 = arith.constant 0 : i32
    %c0_i32_1 = arith.constant 0 : i32
    return %c0_i32, %c0_i32_0 : i32, i32
  }
  func.func @transform_5(%arg0: i32) -> (i32, i32) {
    %c0_i32 = arith.constant 0 : i32
    %c0_i32_0 = arith.constant 0 : i32
    %c0_i32_1 = arith.constant 0 : i32
    return %c0_i32, %c0_i32_0 : i32, i32
  }
  func.func @transform_6(%arg0: i32) -> (i32, i32) {
    %c0_i32 = arith.constant 0 : i32
    %c0_i32_0 = arith.constant 0 : i32
    return %arg0, %c0_i32 : i32, i32
  }
}

</mosaic_0001>

<bundles_post_ra>
// kernel: tpu_custom_call.1
= control target key start
LH: loop header
LB: loop body
LE: loop exit
PB: predicated region body
PF: predicated region fallthrough
CT: control target
= control target key end

     0   :  { %11 = vsyncpa [#allocation3], 0  ;;  %s877_s0 = inlined_call_operand.hbm [shape: f32[4,2048], index: 0, kind: input, shape index: {}]   ;;  %s878_s1 = inlined_call_operand.hbm [shape: f32[4,2048], index: 1, kind: input, shape index: {}]   ;;  %s879_s2 = inlined_call_operand.hbm [shape: f32[256,128], index: 2, kind: input, shape index: {}]   ;;  %s880_s3 = inlined_call_operand.vmem [shape: f32[1,128], index: 3, kind: input, shape index: {}]   ;;  %s881_s4 = inlined_call_operand.hbm [shape: f32[128,128], index: 4, kind: input, shape index: {}]   ;;  %s882_s5 = inlined_call_operand.vmem [shape: f32[1,128], index: 5, kind: input, shape index: {}]   ;;  %s883_s6 = inlined_call_operand.hbm [shape: f32[4,128], index: 6, kind: output, shape index: {}]  }
   0x1   :  { %12 = vsyncpa [#allocation6], 0 }
   0x2   :  { %13 = vsyncpa [#allocation9], 0  ;;  %s30_s23 = scalar_lea.hbm %s878_s1, 512 }
   0x3   :  { %14 = vsyncpa [#allocation4], 0  ;;  %s733_s24 = smov [#allocation5]   ;;  %s734_s26 = smov [#allocation2]  }
   0x4   :  { %s32_s25 = sshll.u32 %s733_s24, 4  ;;  %s21_s27 = sshll.u32 %s734_s26, 4  ;;  %s33_s25 = int_to_ptr.vmem [resolvable:$true] %s32_s25  ;;  %s22_s27 = int_to_ptr.vmem [resolvable:$true] %s21_s27 }
   0x5   :  { %s636_s30 = scalar_lea.hbm %s878_s1, 576  ;;  %s614_s9 = scalar_lea.hbm %s878_s1, 1024 }
   0x6   :  { %p613_p0 = scmp.ne.s32.totalorder %s30_s23, %s636_s30  ;;  %p615_p1 = scmp.lt.u32.totalorder %s30_s23, %s878_s1 }
   0x7   :  { %p616_p2 = scmp.lt.u32.totalorder %s614_s9, %s636_s30  ;;  %p618_p4 = scmp.lt.u32.totalorder %s636_s30, %s30_s23 }
   0x9   :  { %p617_p3 = por %p616_p2, %p615_p1 }
   0xb   :  { %p619_p5 = por %p618_p4, %p617_p3 }
   0xd   :  { %p620_p6 = pnand %p619_p5, %p613_p0 }
   0xf   :  { %623 = shalt.err (!%p620_p6)
}
  0x10   :  { %s624_s12 = scalar_lea.vmem %s33_s25, 64  ;;  %p629_p8 = scmp.lt.s32.totalorder %s33_s25, %s33_s25 }
  0x11   :  { %p625_p7 = scmp.ne.s32.totalorder %s33_s25, %s624_s12  ;;  %p630_p9 = scmp.lt.s32.totalorder %s624_s12, %s624_s12 }
  0x13   :  { %p631_p10 = por %p630_p9, %p629_p8 }
  0x15   :  { %p632_p11 = pnand %p631_p10, %p625_p7 }
  0x17   :  { %635 = shalt.err (!%p632_p11)
}
  0x18   :  { %35 = dma.hbm_to_vmem [thread:$0]  %s30_s23, 64, %s33_s25, [#allocation6]  }
  0x19   :  { %s637_s15 = scalar_lea.hbm %s877_s0, 64  ;;  %s639_s19 = scalar_lea.hbm %s877_s0, 1024 }
  0x1a   :  { %p638_p12 = scmp.ne.s32.totalorder %s877_s0, %s637_s15  ;;  %p640_p13 = scmp.lt.u32.totalorder %s639_s19, %s637_s15 }
  0x1b   :  { %p641_p0 = scmp.lt.u32.totalorder %s637_s15, %s877_s0 }
  0x1d   :  { %p642_p1 = por %p641_p0, %p640_p13 }
  0x1f   :  { %p643_p2 = pnand %p642_p1, %p638_p12 }
  0x21   :  { %646 = shalt.err (!%p643_p2)
}
  0x22   :  { %s647_s22 = scalar_lea.vmem %s22_s27, 64  ;;  %p652_p4 = scmp.lt.s32.totalorder %s22_s27, %s22_s27 }
  0x23   :  { %p648_p3 = scmp.ne.s32.totalorder %s22_s27, %s647_s22  ;;  %p653_p5 = scmp.lt.s32.totalorder %s647_s22, %s647_s22 }
  0x25   :  { %p654_p6 = por %p653_p5, %p652_p4 }
  0x27   :  { %p655_p7 = pnand %p654_p6, %p648_p3 }
  0x29   :  { %658 = shalt.err (!%p655_p7)
}
  0x2a   :  { %24 = dma.hbm_to_vmem [thread:$0]  %s877_s0, 64, %s22_s27, [#allocation3]  }
  0x2b   :  { %s735_s25 = smov [#allocation7]   ;;  %s659_s30 = scalar_lea.hbm %s879_s2, 4096 }
  0x2c   :  { %s41_s26 = sshll.u32 %s735_s25, 4  ;;  %p660_p8 = scmp.ne.s32.totalorder %s879_s2, %s659_s30  ;;  %s42_s26 = int_to_ptr.vmem [resolvable:$true] %s41_s26 }
  0x2d   :  { %p663_p9 = scmp.lt.u32.totalorder %s659_s30, %s879_s2 }
  0x2f   :  { %p665_p10 = pnand %p663_p9, %p660_p8 }
  0x31   :  { %668 = shalt.err (!%p665_p10)
}
  0x32   :  { %s669_s11 = scalar_lea.vmem %s42_s26, 4096  ;;  %p674_p12 = scmp.lt.s32.totalorder %s42_s26, %s42_s26 }
  0x33   :  { %p670_p11 = scmp.ne.s32.totalorder %s42_s26, %s669_s11  ;;  %p675_p13 = scmp.lt.s32.totalorder %s669_s11, %s669_s11 }
  0x35   :  { %p676_p0 = por %p675_p13, %p674_p12 }
  0x37   :  { %p677_p1 = pnand %p676_p0, %p670_p11 }
  0x39   :  { %680 = shalt.err (!%p677_p1)
}
  0x3a   :  { %s736_s0 = smov 128   ;;  %s737_s27 = smov 8  }
  0x3b   :  { %47 = dma.hbm_to_vmem [thread:$0]  %s879_s2, 4096, %s42_s26, [#allocation6], %s736_s0, %s736_s0, %s737_s27  }
  0x3c   :  { %s738_s14 = smov [#allocation8]   ;;  %s681_s17 = scalar_lea.hbm %s881_s4, 2048 }
  0x3d   :  { %s55_s15 = sshll.u32 %s738_s14, 4  ;;  %p682_p2 = scmp.ne.s32.totalorder %s881_s4, %s681_s17  ;;  %s56_s15 = int_to_ptr.vmem [resolvable:$true] %s55_s15 }
  0x3e   :  { %p685_p3 = scmp.lt.u32.totalorder %s681_s17, %s881_s4 }
  0x40   :  { %p687_p4 = pnand %p685_p3, %p682_p2 }
  0x42   :  { %690 = shalt.err (!%p687_p4)
}
  0x43   :  { %s691_s22 = scalar_lea.vmem %s56_s15, 2048  ;;  %p696_p6 = scmp.lt.s32.totalorder %s56_s15, %s56_s15 }
  0x44   :  { %p692_p5 = scmp.ne.s32.totalorder %s56_s15, %s691_s22  ;;  %p697_p7 = scmp.lt.s32.totalorder %s691_s22, %s691_s22 }
  0x46   :  { %p698_p8 = por %p697_p7, %p696_p6 }
  0x48   :  { %p699_p9 = pnand %p698_p8, %p692_p5 }
  0x4a   :  { %702 = shalt.err (!%p699_p9)
}
  0x4b   :  { %61 = dma.hbm_to_vmem [thread:$0]  %s881_s4, 2048, %s56_s15, [#allocation9], %s736_s0, %s736_s0, %s737_s27  }
  0x4c   :  { %725 = dma.done.wait [#allocation3], 64  }
  0x4d   :  { %726 = vsyncadd [#allocation3], 4294967232 }
  0x4e   :  { %727 = dma.done.wait [#allocation6], 4160  }
  0x4f   :  { %728 = vsyncadd [#allocation6], 4294963136 }
  0x50   :  { %729 = dma.done.wait [#allocation9], 2048  }
  0x51   :  { %730 = vsyncadd [#allocation9], 4294965248  ;;  %v739_v0 = vmov 0.0|0.0   ;;  %vm740_vm0 = vmmov 0   ;;  %v741_v1 = vmov 0.0   ;;  %v94_v2 = vld [vmem:[#allocation7 + $0x80] sm:$0xff] }
  0x52   :  { %528 = vmatprep.subr.bf16.mxu0 %v739_v0  ;;  %552 = vmatprep.subr.bf16.mxu1 %v739_v0  ;;  %v95_v3 = vld [vmem:[#allocation7 + $0x88] sm:$0xff]  ;;  %v77_v4 = vld [vmem:[#allocation7] sm:$0xff]  ;;  %v96_v7 = vld [vmem:[#allocation7 + $0x90] sm:$0xff]  ;;  %s742_s28 = smov [#allocation10]  }
  0x53   :  { %455 = vmatprep.mubr.msk.f32.mxu0 %vm740_vm0, %v741_v1  ;;  %490 = vmatprep.mubr.msk.f32.mxu1 %vm740_vm0, %v741_v1  ;;  %v529_v5 = vpack.c.bf16 %v95_v3, %v94_v2  ;;  %v78_v6 = vld [vmem:[#allocation7 + $0x8] sm:$0xff]  ;;  %v97_v8 = vld [vmem:[#allocation7 + $0x98] sm:$0xff]  ;;  %v79_v10 = vld [vmem:[#allocation7 + $0x10] sm:$0xff]  ;;  %s359_s29 = sshll.u32 %s742_s28, 4  ;;  %s360_s29 = int_to_ptr.vmem [resolvable:$true] %s359_s29 }
  0x54   :  { %v553_v9 = vpack.c.bf16 %v78_v6, %v77_v4  ;;  %v80_v11 = vld [vmem:[#allocation7 + $0x18] sm:$0xff]  ;;  %v532_v12 = vpack.c.bf16 %v97_v8, %v96_v7  ;;  %v98_v14 = vld [vmem:[#allocation7 + $0xa0] sm:$0xff]  ;;  %v99_v15 = vld [vmem:[#allocation7 + $0xa8] sm:$0xff]  ;;  %s703_s30 = scalar_lea.vmem %s360_s29, 64  ;;  %p708_p11 = scmp.lt.s32.totalorder %s360_s29, %s360_s29 }
  0x55   :  { %530 = vmatpush3.bf16.msra.mxu0 %v529_v5  ;;  %v556_v13 = vpack.c.bf16 %v80_v11, %v79_v10  ;;  %v81_v16 = vld [vmem:[#allocation7 + $0x20] sm:$0xff]  ;;  %v82_v17 = vld [vmem:[#allocation7 + $0x28] sm:$0xff]  ;;  %v535_v18 = vpack.c.bf16 %v99_v15, %v98_v14  ;;  %v100_v20 = vld [vmem:[#allocation7 + $0xb0] sm:$0xff]  ;;  %p704_p10 = scmp.ne.s32.totalorder %s360_s29, %s703_s30  ;;  %p709_p12 = scmp.lt.s32.totalorder %s703_s30, %s703_s30 }
  0x56   :  { %554 = vmatpush3.bf16.msra.mxu1 %v553_v9  ;;  %531 = vmatprep.subr.bf16.mxu0 %v739_v0  ;;  %v559_v19 = vpack.c.bf16 %v82_v17, %v81_v16  ;;  %v101_v21 = vld [vmem:[#allocation7 + $0xb8] sm:$0xff]  ;;  %v83_v22 = vld [vmem:[#allocation7 + $0x30] sm:$0xff]  ;;  %v102_v26 = vld [vmem:[#allocation7 + $0xc0] sm:$0xff] }
  0x57   :  { %555 = vmatprep.subr.bf16.mxu1 %v739_v0  ;;  %v84_v23 = vld [vmem:[#allocation7 + $0x38] sm:$0xff]  ;;  %v538_v24 = vpack.c.bf16 %v101_v21, %v100_v20  ;;  %v103_v27 = vld [vmem:[#allocation7 + $0xc8] sm:$0xff]  ;;  %v85_v28 = vld [vmem:[#allocation7 + $0x40] sm:$0xff]  ;;  %p710_p13 = por %p709_p12, %p708_p11 }
  0x58   :  { %v562_v25 = vpack.c.bf16 %v84_v23, %v83_v22  ;;  %v86_v29 = vld [vmem:[#allocation7 + $0x48] sm:$0xff]  ;;  %v541_v30 = vpack.c.bf16 %v103_v27, %v102_v26  ;;  %v104_v32 = vld [vmem:[#allocation7 + $0xd0] sm:$0xff]  ;;  %v105_v33 = vld [vmem:[#allocation7 + $0xd8] sm:$0xff] }
  0x59   :  { %533 = vmatpush3.bf16.msra.mxu0 %v532_v12  ;;  %v565_v31 = vpack.c.bf16 %v86_v29, %v85_v28  ;;  %v87_v34 = vld [vmem:[#allocation7 + $0x50] sm:$0xff]  ;;  %v88_v35 = vld [vmem:[#allocation7 + $0x58] sm:$0xff]  ;;  %v544_v36 = vpack.c.bf16 %v105_v33, %v104_v32  ;;  %v106_v38 = vld [vmem:[#allocation7 + $0xe0] sm:$0xff]  ;;  %p711_p0 = pnand %p710_p13, %p704_p10 }
  0x5a   :  { %557 = vmatpush3.bf16.msra.mxu1 %v556_v13  ;;  %534 = vmatprep.subr.bf16.mxu0 %v739_v0  ;;  %v568_v37 = vpack.c.bf16 %v88_v35, %v87_v34  ;;  %v107_v39 = vld [vmem:[#allocation7 + $0xe8] sm:$0xff]  ;;  %v89_v40 = vld [vmem:[#allocation7 + $0x60] sm:$0xff]  ;;  %v108_v44 = vld [vmem:[#allocation7 + $0xf0] sm:$0xff] }
  0x5b   :  { %558 = vmatprep.subr.bf16.mxu1 %v739_v0  ;;  %v90_v41 = vld [vmem:[#allocation7 + $0x68] sm:$0xff]  ;;  %v547_v42 = vpack.c.bf16 %v107_v39, %v106_v38  ;;  %v109_v45 = vld [vmem:[#allocation7 + $0xf8] sm:$0xff]  ;;  %v91_v46 = vld [vmem:[#allocation7 + $0x70] sm:$0xff] }
  0x5c   :  { %v571_v43 = vpack.c.bf16 %v90_v41, %v89_v40  ;;  %v92_v47 = vld [vmem:[#allocation7 + $0x78] sm:$0xff]  ;;  %v550_v48 = vpack.c.bf16 %v109_v45, %v108_v44  ;;  %v259_v50 = vld [vmem:[#allocation8] sm:$0xff]  ;;  %v260_v51 = vld [vmem:[#allocation8 + $0x8] sm:$0xff] }
  0x5d   :  { %536 = vmatpush3.bf16.msra.mxu0 %v535_v18  ;;  %v574_v49 = vpack.c.bf16 %v92_v47, %v91_v46  ;;  %v93_v52 = vld [vmem:[#allocation5] sm:$0xf]  ;;  %v577_v53 = vpack.c.bf16 %v260_v51, %v259_v50  ;;  %v76_v54 = vld [vmem:[#allocation2] sm:$0xf]  ;;  %v261_v55 = vld [vmem:[#allocation8 + $0x10] sm:$0xff] }
  0x5e   :  { %560 = vmatpush3.bf16.msra.mxu1 %v559_v19  ;;  %537 = vmatprep.subr.bf16.mxu0 %v739_v0  ;;  %v262_v56 = vld [vmem:[#allocation8 + $0x18] sm:$0xff]  ;;  %v263_v58 = vld [vmem:[#allocation8 + $0x20] sm:$0xff]  ;;  %v264_v59 = vld [vmem:[#allocation8 + $0x28] sm:$0xff] }
  0x5f   :  { %561 = vmatprep.subr.bf16.mxu1 %v739_v0  ;;  %v580_v57 = vpack.c.bf16 %v262_v56, %v261_v55  ;;  %v583_v60 = vpack.c.bf16 %v264_v59, %v263_v58  ;;  %v265_v61 = vld [vmem:[#allocation8 + $0x30] sm:$0xff]  ;;  %v266_v62 = vld [vmem:[#allocation8 + $0x38] sm:$0xff]  ;;  %v267_v2 = vld [vmem:[#allocation8 + $0x40] sm:$0xff] }
  0x60   :  { %v586_v63 = vpack.c.bf16 %v266_v62, %v265_v61  ;;  %v268_v3 = vld [vmem:[#allocation8 + $0x48] sm:$0xff]  ;;  %v270_v5 = vld [vmem:[#allocation8 + $0x58] sm:$0xff]  ;;  %v271_v7 = vld [vmem:[#allocation8 + $0x60] sm:$0xff] }
  0x61   :  { %539 = vmatpush3.bf16.msra.mxu0 %v538_v24  ;;  %v589_v4 = vpack.c.bf16 %v268_v3, %v267_v2  ;;  %v272_v8 = vld [vmem:[#allocation8 + $0x68] sm:$0xff]  ;;  %v273_v10 = vld [vmem:[#allocation8 + $0x70] sm:$0xff]  ;;  %v274_v11 = vld [vmem:[#allocation8 + $0x78] sm:$0xff] }
  0x62   :  { %563 = vmatpush3.bf16.msra.mxu1 %v562_v25  ;;  %540 = vmatprep.subr.bf16.mxu0 %v739_v0  ;;  %v595_v9 = vpack.c.bf16 %v272_v8, %v271_v7  ;;  %v598_v12 = vpack.c.bf16 %v274_v11, %v273_v10  ;;  %v370_v15 = vld [vmem:[%s880_s3] ss:$0 sm:$0xff] }
  0x63   :  { %564 = vmatprep.subr.bf16.mxu1 %v739_v0  ;;  %v371_v21 = vld [vmem:[%s882_s5] ss:$0 sm:$0xff] }
  0x65   :  { %542 = vmatpush3.bf16.msra.mxu0 %v541_v30 }
  0x66   :  { %566 = vmatpush3.bf16.msra.mxu1 %v565_v31  ;;  %543 = vmatprep.subr.bf16.mxu0 %v739_v0 }
  0x67   :  { %567 = vmatprep.subr.bf16.mxu1 %v739_v0 }
  0x69   :  { %545 = vmatpush3.bf16.msra.mxu0 %v544_v36 }
  0x6a   :  { %569 = vmatpush3.bf16.msra.mxu1 %v568_v37  ;;  %546 = vmatprep.subr.bf16.mxu0 %v739_v0 }
  0x6b   :  { %570 = vmatprep.subr.bf16.mxu1 %v739_v0 }
  0x6d   :  { %548 = vmatpush3.bf16.msra.mxu0 %v547_v42 }
  0x6e   :  { %572 = vmatpush3.bf16.msra.mxu1 %v571_v43  ;;  %549 = vmatprep.subr.bf16.mxu0 %v739_v0 }
  0x6f   :  { %573 = vmatprep.subr.bf16.mxu1 %v739_v0 }
  0x71   :  { %551 = vmatpush3.bf16.msra.mxu0 %v550_v48 }
  0x72   :  { %575 = vmatpush3.bf16.msra.mxu1 %v574_v49  ;;  %576 = vmatprep.subr.bf16.mxu0 %v739_v0 }
  0x74   :  { %456 = vmatmul.mubr.f32.vlgmr.msra.gmra.mrb[0].mxu0 %v93_v52 }
  0x75   :  { %491 = vmatmul.mubr.f32.vlgmr.msra.gmra.mrb[0].mxu1 %v76_v54  ;;  %578 = vmatpush3.bf16.msra.mxu0 %v577_v53 }
  0x76   :  { %579 = vmatprep.subr.bf16.mxu0 %v739_v0  ;;  %525 = vmatprep.mubr.msk.f32.mxu0 %vm740_vm0, %v741_v1  ;;  %v269_v1 = vld [vmem:[#allocation8 + $0x50] sm:$0xff] }
  0x77   :  { %v592_v6 = vpack.c.bf16 %v270_v5, %v269_v1 }
  0x79   :  { %581 = vmatpush3.bf16.msra.mxu0 %v580_v57 }
  0x7a   :  { %582 = vmatprep.subr.bf16.mxu0 %v739_v0 }
  0x7d   :  { %584 = vmatpush3.bf16.msra.mxu0 %v583_v60 }
  0x7e   :  { %585 = vmatprep.subr.bf16.mxu0 %v739_v0 }
  0x81   :  { %587 = vmatpush3.bf16.msra.mxu0 %v586_v63 }
  0x82   :  { %588 = vmatprep.subr.bf16.mxu0 %v739_v0 }
  0x85   :  { %590 = vmatpush3.bf16.msra.mxu0 %v589_v4 }
  0x86   :  { %591 = vmatprep.subr.bf16.mxu0 %v739_v0 }
  0x89   :  { %593 = vmatpush3.bf16.msra.mxu0 %v592_v6 }
  0x8a   :  { %594 = vmatprep.subr.bf16.mxu0 %v739_v0 }
  0x8d   :  { %596 = vmatpush3.bf16.msra.mxu0 %v595_v9 }
  0x8e   :  { %597 = vmatprep.subr.bf16.mxu0 %v739_v0 }
  0x91   :  { %599 = vmatpush3.bf16.msra.mxu0 %v598_v12 }
 0x147   :  { %v176_v13 = vpop.f32.mrb[0].mxu0 }
 0x148   :  { %v246_v14 = vpop.f32.mrb[0].mxu1  ;;  %v457_v16 = vpop.f32.mrb[1].mxu0 }
 0x149   :  { %v247_v17 = vadd.f32 %v246_v14, %v176_v13  ;;  %v492_v18 = vpop.f32.mrb[1].mxu1 }
 0x14b   :  { %v257_v19 = vadd.f32 %v370_v15, %v247_v17 }
 0x14d   :  { %610 = vtanh.f32 %v257_v19 }
 0x157   :  { %v611_v20 = vpop.eup %610 }
 0x158   :  { %526 = vmatmul.mubr.f32.vlgmr.msra.gmra.mrb[2].mxu0 %v611_v20 }
 0x22b   :  { %v348_v0 = vpop.f32.mrb[2].mxu0 }
 0x22c   :  { %v349_v22 = vadd.f32 %v371_v21, %v348_v0  ;;  %v527_v23 = vpop.f32.mrb[3].mxu0 }
 0x22e   :  { %352 = vst [vmem:[#allocation10] sm:$0xf] %v349_v22 }
 0x22f   :  { %714 = shalt.err (!%p711_p0)
}
 0x230   :  { %s715_s8 = scalar_lea.hbm %s883_s6, 64 }
 0x231   :  { %p716_p1 = scmp.ne.s32.totalorder %s883_s6, %s715_s8  ;;  %p719_p2 = scmp.lt.u32.totalorder %s715_s8, %s883_s6 }
 0x233   :  { %p721_p3 = pnand %p719_p2, %p716_p1 }
 0x235   :  { %724 = shalt.err (!%p721_p3)
}
 0x236   :  { %362 = dma.vmem_to_hbm [thread:$0]  %s360_s29, 64, %s883_s6, [#allocation4]  }
 0x237   :  { %731 = dma.done.wait [#allocation4], 64  }
 0x238   :  { %732 = vsyncadd [#allocation4], 4294967232 }
 0x239   :  { %366 = vsyncpa [#allocation3], 1 }
 0x23a   :  { %367 = vsyncpa [#allocation6], 1 }
 0x23b   :  { %368 = vsyncpa [#allocation9], 1 }
 0x23c   :  { %369 = vsyncpa [#allocation4], 1 }

</bundles_post_ra>
